<compile_context>
chip_gen: v6e
topology: v6e:2x2x1
jax: 0.10.0
libtpu: 0.0.40
codegen_flags: <defaults>
</compile_context>

<pallas_src>
import functools

import jax
import jax.numpy as jnp
from jax.experimental import pallas as pl
from jax.experimental.pallas import tpu as pltpu

HIDDEN = 100        # logical hidden size fixed by the module
LANE = 128          # TPU lane width
SUBLANE = 8


def _round_up(n, m):
    return ((n + m - 1) // m) * m


def _actor_kernel(x_ref, w1_ref, b1_ref, w2_ref, b2_ref, out_ref, *, num_action):
    # x: (TB, S) bf16, w1: (S, Hp) bf16, b1: (1, Hp) f32,
    # w2: (Hp, Ap) bf16, b2: (1, Ap) f32, out: (TB, Ap) f32
    x = x_ref[...]

    # fc1 + ReLU (f32 accumulation, f32 elementwise)
    h = jnp.dot(x, w1_ref[...], preferred_element_type=jnp.float32) + b1_ref[...]
    h = jnp.maximum(h, 0.0)

    # action_head (feed MXU bf16, accumulate f32)
    logits = (
        jnp.dot(h.astype(w2_ref.dtype), w2_ref[...],
                preferred_element_type=jnp.float32)
        + b2_ref[...]
    )

    # Mask padded action lanes so they carry zero probability mass.
    lane = jax.lax.broadcasted_iota(jnp.int32, logits.shape, dimension=1)
    logits = jnp.where(lane < num_action, logits, -jnp.inf)

    # Numerically stable softmax over dim=1; reciprocal on the EUP slot.
    m = jnp.max(logits, axis=1, keepdims=True)
    e = jnp.exp(logits - m)
    denom = jnp.sum(e, axis=1, keepdims=True)
    out_ref[...] = (e * pl.reciprocal(denom, approx=True)).astype(out_ref.dtype)


def old_actor_forward(x, w1, b1, w2, b2, *, block_b=256):
    """x: (B, num_state) f32; weights as (in, out). Returns (B, num_action) probs."""
    B, S = x.shape
    H = w1.shape[1]
    A = w2.shape[1]
    assert w1.shape == (S, H) and b1.shape == (1, H)
    assert w2.shape == (H, A) and b2.shape == (1, A)

    # Lane-dense padding of hidden and action dims.
    Hp = _round_up(H, LANE)
    Ap = _round_up(A, LANE)

    # Batch tiling: small batches become a single (8-aligned) tile, large batches
    # are tiled into block_b-row chunks that pipeline over a parallel grid.
    if B <= block_b:
        TB = _round_up(B, SUBLANE)
        Bp = TB
    else:
        TB = block_b
        Bp = _round_up(B, TB)

    # Zero-padding is exact through fc1/ReLU; padded action lanes are masked
    # to -inf inside the kernel before softmax.
    xp = jnp.pad(x, ((0, Bp - B), (0, 0))).astype(jnp.bfloat16)
    w1p = jnp.pad(w1, ((0, 0), (0, Hp - H))).astype(jnp.bfloat16)
    b1p = jnp.pad(b1, ((0, 0), (0, Hp - H))).astype(jnp.float32)
    w2p = jnp.pad(w2, ((0, Hp - H), (0, Ap - A))).astype(jnp.bfloat16)
    b2p = jnp.pad(b2, ((0, 0), (0, Ap - A))).astype(jnp.float32)

    grid = (Bp // TB,)

    out_padded = pl.pallas_call(
        functools.partial(_actor_kernel, num_action=A),
        out_shape=jax.ShapeDtypeStruct((Bp, Ap), jnp.float32),
        grid=grid,
        in_specs=[
            pl.BlockSpec((TB, S), lambda i: (i, 0)),    # x tile (pipelined)
            pl.BlockSpec((S, Hp), lambda i: (0, 0)),    # w1 resident
            pl.BlockSpec((1, Hp), lambda i: (0, 0)),    # b1 resident
            pl.BlockSpec((Hp, Ap), lambda i: (0, 0)),   # w2 resident
            pl.BlockSpec((1, Ap), lambda i: (0, 0)),    # b2 resident
        ],
        out_specs=pl.BlockSpec((TB, Ap), lambda i: (i, 0)),
        compiler_params=pltpu.CompilerParams(
            dimension_semantics=("parallel",),
        ),
    )(xp, w1p, b1p, w2p, b2p)

    return out_padded[:B, :A]


def init_params(key, num_state, num_action):
    """Deterministic synthetic parameters (shapes match the nn.Linear layers,
    stored transposed as (in, out))."""
    k1, k2, k3, k4 = jax.random.split(key, 4)
    w1 = jax.random.normal(k1, (num_state, HIDDEN), jnp.float32) * 0.1
    b1 = jax.random.normal(k2, (1, HIDDEN), jnp.float32) * 0.1
    w2 = jax.random.normal(k3, (HIDDEN, num_action), jnp.float32) * 0.1
    b2 = jax.random.normal(k4, (1, num_action), jnp.float32) * 0.1
    return w1, b1, w2, b2


def _reference(x, w1, b1, w2, b2):
    h = jnp.maximum(x @ w1 + b1, 0.0)
    logits = h @ w2 + b2
    return jax.nn.softmax(logits, axis=1)


if __name__ == "__main__":
    num_state, num_action, batch = 32, 4, 8

    key = jax.random.PRNGKey(0)
    kx, kp = jax.random.split(key)
    x = jax.random.normal(kx, (batch, num_state), jnp.float32)
    w1, b1, w2, b2 = init_params(kp, num_state, num_action)

    probs = old_actor_forward(x, w1, b1, w2, b2)
    probs = jax.block_until_ready(probs)

    # Sanity checks: shape, rows sum to ~1, and close to an f32 reference
    # (loose tolerance: bf16 MXU operands + approx reciprocal).
    assert probs.shape == (batch, num_action)
    assert bool(jnp.allclose(jnp.sum(probs, axis=1), 1.0, atol=2e-2))
    ref = _reference(x, w1, b1, w2, b2)
    assert bool(jnp.allclose(probs, ref, atol=5e-2))

    print("KERNEL_OK")
</pallas_src>

<mosaic_0001>
module attributes {stable_mosaic.version = 11 : i64} {
  func.func @_actor_kernel(%arg0: i32, %arg1: memref<8x32xbf16, #tpu.memory_space<vmem>>, %arg2: memref<32x128xbf16, #tpu.memory_space<vmem>>, %arg3: memref<1x128xf32, #tpu.memory_space<vmem>>, %arg4: memref<128x128xbf16, #tpu.memory_space<vmem>>, %arg5: memref<1x128xf32, #tpu.memory_space<vmem>>, %arg6: memref<8x128xf32, #tpu.memory_space<vmem>>) attributes {dimension_semantics = [#tpu.dimension_semantics<parallel>], iteration_bounds = array<i64: 1>, scalar_prefetch = 0 : i64, scratch_operands = 0 : i64, tpu.core_type = #tpu.core_type<tc>, window_params = [{transform_indices = @transform_0, window_bounds = array<i64: 8, 32>}, {pipeline_mode = #tpu.pipeline_mode<synchronous>, transform_indices = @transform_1, window_bounds = array<i64: 32, 128>}, {pipeline_mode = #tpu.pipeline_mode<synchronous>, transform_indices = @transform_2, window_bounds = array<i64: 1, 128>}, {pipeline_mode = #tpu.pipeline_mode<synchronous>, transform_indices = @transform_3, window_bounds = array<i64: 128, 128>}, {pipeline_mode = #tpu.pipeline_mode<synchronous>, transform_indices = @transform_4, window_bounds = array<i64: 1, 128>}, {transform_indices = @transform_5, window_bounds = array<i64: 8, 128>}]} {
    %c0 = arith.constant 0 : index
    %c0_0 = arith.constant 0 : index
    %0 = vector.load %arg1[%c0, %c0_0] : memref<8x32xbf16, #tpu.memory_space<vmem>>, vector<8x32xbf16>
    %c0_1 = arith.constant 0 : index
    %c0_2 = arith.constant 0 : index
    %1 = vector.load %arg2[%c0_1, %c0_2] : memref<32x128xbf16, #tpu.memory_space<vmem>>, vector<32x128xbf16>
    %cst = arith.constant dense<0.000000e+00> : vector<8x128xf32>
    %2 = tpu.matmul %0, %1, %cst {dimension_numbers = #tpu.dot_dimension_numbers<[1], [0], [0], [1], [0, 0, 1, 1], [], []>} : vector<8x32xbf16>, vector<32x128xbf16>, vector<8x128xf32> -> vector<8x128xf32>
    %c0_3 = arith.constant 0 : index
    %c0_4 = arith.constant 0 : index
    %3 = vector.load %arg3[%c0_3, %c0_4] : memref<1x128xf32, #tpu.memory_space<vmem>>, vector<1x128xf32>
    %4 = vector.broadcast %3 : vector<1x128xf32> to vector<8x128xf32>
    %5 = arith.addf %2, %4 : vector<8x128xf32>
    %cst_5 = arith.constant 0.000000e+00 : f32
    %6 = vector.broadcast %cst_5 : f32 to vector<8x128xf32>
    %7 = arith.maximumf %5, %6 : vector<8x128xf32>
    %8 = arith.truncf %7 : vector<8x128xf32> to vector<8x128xbf16>
    %c0_6 = arith.constant 0 : index
    %c0_7 = arith.constant 0 : index
    %9 = vector.load %arg4[%c0_6, %c0_7] : memref<128x128xbf16, #tpu.memory_space<vmem>>, vector<128x128xbf16>
    %cst_8 = arith.constant dense<0.000000e+00> : vector<8x128xf32>
    %10 = tpu.matmul %8, %9, %cst_8 {dimension_numbers = #tpu.dot_dimension_numbers<[1], [0], [0], [1], [0, 0, 1, 1], [], []>} : vector<8x128xbf16>, vector<128x128xbf16>, vector<8x128xf32> -> vector<8x128xf32>
    %c0_9 = arith.constant 0 : index
    %c0_10 = arith.constant 0 : index
    %11 = vector.load %arg5[%c0_9, %c0_10] : memref<1x128xf32, #tpu.memory_space<vmem>>, vector<1x128xf32>
    %12 = vector.broadcast %11 : vector<1x128xf32> to vector<8x128xf32>
    %13 = arith.addf %10, %12 : vector<8x128xf32>
    %14 = tpu.iota {dimensions = array<i32: 1>} : vector<8x128xi32>
    %c4_i32 = arith.constant 4 : i32
    %15 = vector.broadcast %c4_i32 : i32 to vector<8x128xi32>
    %16 = arith.cmpi slt, %14, %15 : vector<8x128xi32>
    %cst_11 = arith.constant 0xFF800000 : f32
    %17 = vector.broadcast %cst_11 : f32 to vector<8x128xf32>
    %18 = arith.select %16, %13, %17 : vector<8x128xi1>, vector<8x128xf32>
    %cst_12 = arith.constant dense<0xFF800000> : vector<8xf32>
    %19 = vector.multi_reduction <maximumf>, %18, %cst_12 [1] : vector<8x128xf32> to vector<8xf32>
    %20 = vector.shape_cast %19 : vector<8xf32> to vector<8x1xf32>
    %21 = vector.broadcast %20 : vector<8x1xf32> to vector<8x128xf32>
    %22 = arith.subf %18, %21 : vector<8x128xf32>
    %23 = math.exp %22 : vector<8x128xf32>
    %cst_13 = arith.constant dense<0.000000e+00> : vector<8xf32>
    %24 = vector.multi_reduction <add>, %23, %cst_13 [1] : vector<8x128xf32> to vector<8xf32>
    %25 = vector.shape_cast %24 : vector<8xf32> to vector<8x1xf32>
    %26 = tpu.reciprocal %25 {approx = true} : vector<8x1xf32> -> vector<8x1xf32>
    %27 = vector.broadcast %26 : vector<8x1xf32> to vector<8x128xf32>
    %28 = arith.mulf %23, %27 : vector<8x128xf32>
    %c0_14 = arith.constant 0 : index
    %c0_15 = arith.constant 0 : index
    %29 = vector.load %arg6[%c0_14, %c0_15] : memref<8x128xf32, #tpu.memory_space<vmem>>, vector<8x128xf32>
    tpu.vector_store %arg6[%c0_14, %c0_15], %28 {strides = array<i32>} : memref<8x128xf32, #tpu.memory_space<vmem>>, vector<8x128xf32>,
    return
  }
  func.func @transform_0(%arg0: i32) -> (i32, i32) {
    %c0_i32 = arith.constant 0 : i32
    %c0_i32_0 = arith.constant 0 : i32
    return %arg0, %c0_i32 : i32, i32
  }
  func.func @transform_1(%arg0: i32) -> (i32, i32) {
    %c0_i32 = arith.constant 0 : i32
    %c0_i32_0 = arith.constant 0 : i32
    %c0_i32_1 = arith.constant 0 : i32
    return %c0_i32, %c0_i32_0 : i32, i32
  }
  func.func @transform_2(%arg0: i32) -> (i32, i32) {
    %c0_i32 = arith.constant 0 : i32
    %c0_i32_0 = arith.constant 0 : i32
    %c0_i32_1 = arith.constant 0 : i32
    return %c0_i32, %c0_i32_0 : i32, i32
  }
  func.func @transform_3(%arg0: i32) -> (i32, i32) {
    %c0_i32 = arith.constant 0 : i32
    %c0_i32_0 = arith.constant 0 : i32
    %c0_i32_1 = arith.constant 0 : i32
    return %c0_i32, %c0_i32_0 : i32, i32
  }
  func.func @transform_4(%arg0: i32) -> (i32, i32) {
    %c0_i32 = arith.constant 0 : i32
    %c0_i32_0 = arith.constant 0 : i32
    %c0_i32_1 = arith.constant 0 : i32
    return %c0_i32, %c0_i32_0 : i32, i32
  }
  func.func @transform_5(%arg0: i32) -> (i32, i32) {
    %c0_i32 = arith.constant 0 : i32
    %c0_i32_0 = arith.constant 0 : i32
    return %arg0, %c0_i32 : i32, i32
  }
}

</mosaic_0001>

<bundles_post_ra>
// kernel: tpu_custom_call.1
= control target key start
LH: loop header
LB: loop body
LE: loop exit
PB: predicated region body
PF: predicated region fallthrough
CT: control target
= control target key end

     0   :  { %10 = vsyncpa [#allocation3], 0  ;;  %s489_s0 = inlined_call_operand.hbm [shape: bf16[8,32], index: 0, kind: input, shape index: {}]   ;;  %s490_s1 = inlined_call_operand.hbm [shape: bf16[32,128], index: 1, kind: input, shape index: {}]   ;;  %s491_s2 = inlined_call_operand.vmem [shape: f32[1,128], index: 2, kind: input, shape index: {}]   ;;  %s492_s3 = inlined_call_operand.hbm [shape: bf16[128,128], index: 3, kind: input, shape index: {}]   ;;  %s493_s4 = inlined_call_operand.vmem [shape: f32[1,128], index: 4, kind: input, shape index: {}]   ;;  %s494_s5 = inlined_call_operand.hbm [shape: f32[8,128], index: 5, kind: output, shape index: {}]  }
   0x1   :  { %11 = vsyncpa [#allocation6], 0 }
   0x2   :  { %12 = vsyncpa [#allocation4], 0  ;;  %s433_s18 = smov [#allocation5]  }
   0x3   :  { %s28_s19 = sshll.u32 %s433_s18, 4  ;;  %s29_s19 = int_to_ptr.vmem [resolvable:$true] %s28_s19 }
   0x4   :  { %s355_s20 = scalar_lea.vmem %s29_s19, 256  ;;  %p360_p1 = scmp.lt.s32.totalorder %s29_s19, %s29_s19 }
   0x5   :  { %p356_p0 = scmp.ne.s32.totalorder %s29_s19, %s355_s20  ;;  %p361_p2 = scmp.lt.s32.totalorder %s355_s20, %s355_s20 }
   0x7   :  { %p362_p3 = por %p361_p2, %p360_p1 }
   0x9   :  { %p363_p4 = pnand %p362_p3, %p356_p0 }
   0xb   :  { %366 = shalt.err (!%p363_p4)
}
   0xc   :  { %s434_s21 = smov 64   ;;  %s435_s22 = smov 4  }
   0xd   :  { %34 = dma.hbm_to_vmem [thread:$0]  %s490_s1, 256, %s29_s19, [#allocation6], %s434_s21, %s434_s21, %s435_s22  }
   0xe   :  { %s436_s25 = smov [#allocation2]   ;;  %s437_s27 = smov [#allocation7]  }
   0xf   :  { %s19_s26 = sshll.u32 %s436_s25, 4  ;;  %s42_s28 = sshll.u32 %s437_s27, 4  ;;  %s20_s26 = int_to_ptr.vmem [resolvable:$true] %s19_s26  ;;  %s43_s28 = int_to_ptr.vmem [resolvable:$true] %s42_s28 }
  0x10   :  { %s375_s29 = scalar_lea.vmem %s20_s26, 64  ;;  %p380_p6 = scmp.lt.s32.totalorder %s20_s26, %s20_s26 }
  0x11   :  { %p376_p5 = scmp.ne.s32.totalorder %s20_s26, %s375_s29  ;;  %p381_p7 = scmp.lt.s32.totalorder %s375_s29, %s375_s29 }
  0x13   :  { %p382_p8 = por %p381_p7, %p380_p6 }
  0x15   :  { %p383_p9 = pnand %p382_p8, %p376_p5 }
  0x17   :  { %386 = shalt.err (!%p383_p9)
}
  0x18   :  { %22 = dma.hbm_to_vmem [thread:$0]  %s489_s0, 64, %s20_s26, [#allocation3]  }
  0x19   :  { %s395_s7 = scalar_lea.vmem %s43_s28, 1024  ;;  %p400_p11 = scmp.lt.s32.totalorder %s43_s28, %s43_s28 }
  0x1a   :  { %p396_p10 = scmp.ne.s32.totalorder %s43_s28, %s395_s7  ;;  %p401_p12 = scmp.lt.s32.totalorder %s395_s7, %s395_s7 }
  0x1c   :  { %p402_p13 = por %p401_p12, %p400_p11 }
  0x1e   :  { %p403_p0 = pnand %p402_p13, %p396_p10 }
  0x20   :  { %406 = shalt.err (!%p403_p0)
}
  0x21   :  { %48 = dma.hbm_to_vmem [thread:$0]  %s492_s3, 1024, %s43_s28, [#allocation6], %s434_s21, %s434_s21, %s435_s22  }
  0x22   :  { %427 = dma.done.wait [#allocation3], 64  }
  0x23   :  { %428 = vsyncadd [#allocation3], 4294967232 }
  0x24   :  { %429 = dma.done.wait [#allocation6], 1280  }
  0x25   :  { %430 = vsyncadd [#allocation6], 4294966016  ;;  %v438_v0 = vmov 0.0   ;;  %vm439_vm0 = vmmov 0   ;;  %v333_v1 = vld [vmem:[#allocation5 + $0x8] sm:$0xff]   ;;  %v334_v2 = vld [vmem:[#allocation5] sm:$0xff]   ;;  %v242_v20 = vlaneseq }
  0x26   :  { %297 = vmatprep.subr.bf16.mxu0 %v438_v0  ;;  %301 = vmatprep.mubr.msk.bf16.mxu0 %vm439_vm0, %v438_v0  ;;  %v335_v3 = vld [vmem:[#allocation7 + $0x38] sm:$0xff]   ;;  %vm85_vm1 = vcmask 261120   ;;  %v336_v4 = vld [vmem:[#allocation7 + $0x30] sm:$0xff]   ;;  %v61_v5 = vld [vmem:[#allocation2] sm:$0xf] }
  0x27   :  { %305 = vmatprep.subr.bf16.mxu1 %v438_v0  ;;  %321 = vmatprep.mubr.msk.bf16.mxu1 %vm439_vm0, %v438_v0  ;;  %v337_v6 = vld [vmem:[#allocation7 + $0x28] sm:$0xff]   ;;  %v338_v7 = vld [vmem:[#allocation7 + $0x20] sm:$0xff]   ;;  %v339_v8 = vld [vmem:[#allocation7 + $0x18] sm:$0xff]   ;;  %v243_v21 = vand.u32 127, %v242_v20 }
  0x28   :  { %298 = vmatpush3.bf16.msra.mxu0 %v333_v1  ;;  %306 = vmatpush3.bf16.msra.mxu1 %v335_v3  ;;  %v340_v9 = vld [vmem:[#allocation7 + $0x10] sm:$0xff]   ;;  %v341_v10 = vld [vmem:[#allocation7 + $0x8] sm:$0xff]   ;;  %v342_v11 = vld [vmem:[#allocation7] sm:$0xff]  }
  0x29   :  { %299 = vmatprep.subr.bf16.mxu0 %v438_v0  ;;  %307 = vmatprep.subr.bf16.mxu1 %v438_v0  ;;  %v272_v12 = vld [vmem:[%s491_s2] ss:$0 sm:$0xff]  ;;  %vm244_vm2 = vcmp.lt.s32.totalorder %v243_v21, 4  ;;  %s440_s2 = smov [#allocation8]  }
  0x2a   :  { %v276_v22 = vld [vmem:[%s493_s4] ss:$0 sm:$0xff]  ;;  %s262_s11 = sshll.u32 %s440_s2, 4  ;;  %s263_s11 = int_to_ptr.vmem [resolvable:$true] %s262_s11 }
  0x2b   :  { %s407_s4 = scalar_lea.vmem %s263_s11, 128  ;;  %p412_p2 = scmp.lt.s32.totalorder %s263_s11, %s263_s11 }
  0x2c   :  { %300 = vmatpush3.bf16.msra.mxu0 %v334_v2  ;;  %308 = vmatpush3.bf16.msra.mxu1 %v336_v4  ;;  %p408_p1 = scmp.ne.s32.totalorder %s263_s11, %s407_s4  ;;  %p413_p3 = scmp.lt.s32.totalorder %s407_s4, %s407_s4 }
  0x2d   :  { %309 = vmatprep.subr.bf16.mxu1 %v438_v0 }
  0x2e   :  { %p414_p4 = por %p413_p3, %p412_p2 }
  0x2f   :  { %302 = vmatmul.mubr.msk.bf16.vlgmr.msra.gmra.mxu0 %vm85_vm1, %v61_v5 }
  0x30   :  { %310 = vmatpush3.bf16.msra.mxu1 %v337_v6  ;;  %p415_p5 = pnand %p414_p4, %p408_p1 }
  0x31   :  { %311 = vmatprep.subr.bf16.mxu1 %v438_v0 }
  0x34   :  { %312 = vmatpush3.bf16.msra.mxu1 %v338_v7 }
  0x35   :  { %313 = vmatprep.subr.bf16.mxu1 %v438_v0 }
  0x38   :  { %314 = vmatpush3.bf16.msra.mxu1 %v339_v8 }
  0x39   :  { %315 = vmatprep.subr.bf16.mxu1 %v438_v0 }
  0x3c   :  { %316 = vmatpush3.bf16.msra.mxu1 %v340_v9 }
  0x3d   :  { %317 = vmatprep.subr.bf16.mxu1 %v438_v0 }
  0x40   :  { %318 = vmatpush3.bf16.msra.mxu1 %v341_v10 }
  0x41   :  { %319 = vmatprep.subr.bf16.mxu1 %v438_v0 }
  0x44   :  { %320 = vmatpush3.bf16.msra.mxu1 %v342_v11 }
  0xef   :  { %v123_v13 = vpop.f32.mrf.mxu0 }
  0xf0   :  { %v124_v14 = vadd.f32 %v272_v12, %v123_v13 }
  0xf1   :  { %v303_v15 = vpop.f32.mrf.mxu0 }
  0xf2   :  { %v129_v16 = vmax.f32 %v124_v14, 0.0 }
  0xf3   :  { %v126_v17 = vpop.f32.mrf.mxu0 }
  0xf4   :  { %v130_v18 = vpack.c.bf16 %v129_v16, %v129_v16 }
  0xf5   :  { %v304_v19 = vpop.f32.mrf.mxu0 }
  0xf6   :  { %322 = vmatmul.mubr.bf16.vlgmr.msra.gmra.mxu1 %v130_v18 }
 0x1b6   :  { %v236_v23 = vpop.f32.mrf.mxu1 }
 0x1b7   :  { %v237_v24 = vadd.f32 %v276_v22, %v236_v23 }
 0x1b8   :  { %v323_v25 = vpop.f32.mrf.mxu1 }
 0x1b9   :  { %v245_v26 = vsel %vm244_vm2, %v237_v24, -inf }
 0x1ba   :  { %246 = vmax.xlane.f32.xlu0 %v245_v26  ;;  %v239_v27 = vpop.f32.mrf.mxu1 }
 0x1bc   :  { %v324_v28 = vpop.f32.mrf.mxu1 }
 0x243   :  { %v247_v29 = vpop.xlane.xlu0 %246 }
 0x244   :  { %v248_v30 = vsub.f32 %v245_v26, %v247_v29 }
 0x246   :  { %v249_v31 = vmul.f32 1.442695, %v248_v30 }
 0x248   :  { %343 = vpow2.f32 %v249_v31 }
 0x255   :  { %v344_v32 = vpop.eup %343 }
 0x256   :  { %251 = vadd.xlane.f32.xlu0 %v344_v32 }
 0x2df   :  { %v252_v33 = vpop.xlane.xlu0 %251 }
 0x2e0   :  { %345 = vrcp.f32 %v252_v33 }
 0x2ed   :  { %v346_v34 = vpop.eup %345 }
 0x2ee   :  { %v254_v35 = vmul.f32 %v346_v34, %v344_v32 }
 0x2f0   :  { %255 = vst [vmem:[#allocation8] sm:$0xff] %v254_v35 }
 0x2f1   :  { %418 = shalt.err (!%p415_p5)
}
 0x2f2   :  { %265 = dma.vmem_to_hbm [thread:$0]  %s263_s11, 128, %s494_s5, [#allocation4]  }
 0x2f3   :  { %431 = dma.done.wait [#allocation4], 128  }
 0x2f4   :  { %432 = vsyncadd [#allocation4], 4294967168 }
 0x2f5   :  { %269 = vsyncpa [#allocation3], 1 }
 0x2f6   :  { %270 = vsyncpa [#allocation6], 1 }
 0x2f7   :  { %271 = vsyncpa [#allocation4], 1 }

</bundles_post_ra>
